<compile_context>
chip_gen: v7x
topology: tpu7x:2x2x1
jax: 0.10.0
libtpu: 0.0.40
codegen_flags: <defaults>
</compile_context>

<pallas_src>
import functools

import jax
import jax.numpy as jnp
from jax.experimental import pallas as pl
from jax.experimental.pallas import tpu as pltpu

_LANE = 128


def _round_up(x, m):
    return (x + m - 1) // m * m


def _cdiv(a, b):
    return (a + b - 1) // b


# -----------------------------------------------------------------------------
# Generation-aware hardware capabilities (with safe fallbacks).
# -----------------------------------------------------------------------------
@functools.lru_cache(maxsize=1)
def _tpu_caps():
    """Returns (vmem_capacity_bytes, ep_granule, tensorcores_per_device)."""
    vmem_cap = 64 * 1024 * 1024      # conservative default (v7x-sized VMEM)
    granule = _LANE                  # MXU column granularity used for Ep padding
    num_cores = 1
    try:
        kind = jax.devices()[0].device_kind.lower()
    except Exception:
        kind = ""
    if "v6" in kind:                         # v6e: 128 MiB VMEM, 256-wide MXU, 1 TC
        vmem_cap, granule, num_cores = 128 << 20, 256, 1
    elif "v5p" in kind:                      # v5p: 128 MiB VMEM, 128 MXU, 2 TCs
        vmem_cap, granule, num_cores = 128 << 20, _LANE, 2
    elif "v5" in kind:                       # v5e / "v5 lite": 128 MiB, 128 MXU, 1 TC
        vmem_cap, granule, num_cores = 128 << 20, _LANE, 1
    elif "v4" in kind:
        vmem_cap, granule, num_cores = 128 << 20, _LANE, 2
    elif "v3" in kind or "v2" in kind:
        vmem_cap, granule, num_cores = 16 << 20, _LANE, 2
    elif "7" in kind:                        # TPU7x: 64 MiB VMEM per TC, 256 MXU, 2 TCs
        vmem_cap, granule, num_cores = 64 << 20, 256, 2
    try:
        info = pltpu.get_tpu_info()
        vmem_cap = int(getattr(info, "vmem_capacity_bytes", vmem_cap)) or vmem_cap
    except Exception:
        pass
    return vmem_cap, granule, num_cores


def _budgets():
    vmem_cap, granule, num_cores = _tpu_caps()
    tile_budget = int(0.40 * vmem_cap)   # per-step (double-buffered) tile footprint
    vmem_limit = int(0.80 * vmem_cap)    # leaves headroom for Mosaic internal scratch
    return tile_budget, vmem_limit, granule, num_cores


# -----------------------------------------------------------------------------
# One-time parameter prep (outside the per-forward hot path).
# -----------------------------------------------------------------------------
def prepare_patch_embed_params(weight, bias):
    """PyTorch Conv2d params -> kernel-friendly layout.

    weight: (E, C, P, P), bias: (E,)  ->  w_ke: (K, Ep) bf16, b2d: (1, Ep) f32
    with K = C*P*P; Ep = E rounded up to the MXU/lane granule (128, or 256 on
    v6e/v7x when E > 128).  K rows are in (c, ph, pw) order, matching both kernels.
    """
    e, c, p, _ = weight.shape
    k = c * p * p
    _, _, granule, _ = _budgets()
    ep = _round_up(e, _LANE)
    if granule > _LANE and e > _LANE:
        ep = _round_up(e, granule)
    w_ke = weight.reshape(e, k).T.astype(jnp.bfloat16)       # (K, E)
    b = bias.astype(jnp.float32)
    if ep != e:
        w_ke = jnp.pad(w_ke, ((0, 0), (0, ep - e)))
        b = jnp.pad(b, (0, ep - e))
    return w_ke, b.reshape(1, ep)


# -----------------------------------------------------------------------------
# Kernel bodies.
# -----------------------------------------------------------------------------
def _fused_patch_embed_kernel(x_ref, w_ref, b_ref, o_ref):
    """x block (C, R, P, Wp, Pw): rearrange in VMEM to (R*Wp, K), MXU dot, + bias."""
    c, r, p, wp, pw = x_ref.shape
    xb = x_ref[...]                                   # x dtype (f32/bf16)
    xb = jnp.transpose(xb, (1, 3, 0, 2, 4))           # (R, Wp, C, P, Pw) - XLU relayout
    patches = xb.reshape(r * wp, c * p * pw).astype(jnp.bfloat16)
    acc = jnp.dot(patches, w_ref[...], preferred_element_type=jnp.float32)
    o_ref[...] = (acc + b_ref[...]).astype(o_ref.dtype)


def _gemm_bias_kernel(p_ref, w_ref, b_ref, o_ref):
    """Single-K-step GEMM + bias (no accumulator scratch, no pl.when phases)."""
    o_ref[...] = (jnp.dot(p_ref[...], w_ref[...], preferred_element_type=jnp.float32)
                  + b_ref[...]).astype(o_ref.dtype)


def _gemm_bias_acc_kernel(p_ref, w_ref, b_ref, o_ref, acc_ref):
    """K-tiled GEMM with f32 VMEM accumulator (only used for huge K)."""
    kk = pl.program_id(2)

    @pl.when(kk == 0)
    def _():
        acc_ref[...] = jnp.zeros_like(acc_ref)

    acc_ref[...] += jnp.dot(p_ref[...], w_ref[...], preferred_element_type=jnp.float32)

    @pl.when(kk == pl.num_programs(2) - 1)
    def _():
        o_ref[...] = (acc_ref[...] + b_ref[...]).astype(o_ref.dtype)


# -----------------------------------------------------------------------------
# Fused path: patch extraction done inside the kernel (no extra HBM pass over x).
# -----------------------------------------------------------------------------
def _fused_row_block(x_shape, x_itemsize, patch_size, ep, out_itemsize, budget):
    """Largest patch-row block R (R | Hp) that fits the VMEM budget, or None."""
    _, c, h, w = x_shape
    p = patch_size
    hp, wp = h // p, w // p
    kdim = c * p * p
    for r in sorted((d for d in range(1, hp + 1) if hp % d == 0), reverse=True):
        tm = r * wp
        if not (r == hp or tm % 8 == 0):       # lane/sublane-legal output block
            continue
        if tm > 2048:
            continue
        xblk = c * r * p * w * x_itemsize
        est = (2 * xblk                        # x block, double-buffered
               + 3 * c * r * p * w * 4         # rearrange temporaries (f32), generous
               + tm * kdim * 2                 # bf16 patches temporary
               + 2 * kdim * ep * 2             # full weight, double-buffered
               + 2 * ep * 4                    # bias
               + tm * ep * 4                   # f32 dot result before the cast
               + 2 * tm * ep * out_itemsize)   # output block, double-buffered
        if est <= budget:
            return r
    return None


def _fused_call(x, w_ke, b2d, *, patch_size, r_rows, out_dtype, vmem_limit):
    """Fused extraction + projection.  Returns (B, N, Ep)."""
    bsz, c, h, w = x.shape
    p = patch_size
    hp, wp = h // p, w // p
    n = hp * wp
    kdim = c * p * p
    ep = w_ke.shape[1]
    nr = hp // r_rows
    tm = r_rows * wp
    x6 = x.reshape(bsz, c, hp, p, wp, p)               # free view of NCHW
    out_itemsize = jnp.dtype(out_dtype).itemsize
    cost = pl.CostEstimate(
        flops=2 * bsz * n * kdim * ep,
        transcendentals=0,
        bytes_accessed=(x.size * x.dtype.itemsize + kdim * ep * 2 + ep * 4
                        + bsz * n * ep * out_itemsize),
    )
    return pl.pallas_call(
        _fused_patch_embed_kernel,
        out_shape=jax.ShapeDtypeStruct((bsz, n, ep), out_dtype),
        grid_spec=pltpu.PrefetchScalarGridSpec(
            num_scalar_prefetch=0,
            grid=(bsz, nr),
            in_specs=[
                pl.BlockSpec((None, c, r_rows, p, wp, p),
                             lambda b, rr: (b, 0, rr, 0, 0, 0)),
                pl.BlockSpec((kdim, ep), lambda b, rr: (0, 0)),   # weight: fetched once
                pl.BlockSpec((1, ep), lambda b, rr: (0, 0)),
            ],
            out_specs=pl.BlockSpec((None, tm, ep), lambda b, rr: (b, rr, 0)),
        ),
        compiler_params=pltpu.CompilerParams(
            dimension_semantics=("parallel", "parallel"),
            vmem_limit_bytes=vmem_limit,
        ),
        cost_estimate=cost,
    )(x6, w_ke, b2d)


@functools.lru_cache(maxsize=None)
def _fused_probe_ok(x_shape, x_dtype_str, patch_size, ep, r_rows, out_dtype_str,
                    vmem_limit):
    """Compile + run + numerics-check the fused kernel once per shape signature."""
    try:
        bsz, c, h, w = x_shape
        p = patch_size
        hp, wp = h // p, w // p
        kdim = c * p * p
        kx, kw, kb = jax.random.split(jax.random.PRNGKey(1234), 3)
        x = (0.5 * jax.random.normal(kx, x_shape, dtype=jnp.float32)).astype(x_dtype_str)
        wk = (0.05 * jax.random.normal(kw, (kdim, ep), dtype=jnp.float32)
              ).astype(jnp.bfloat16)
        b2 = 0.05 * jax.random.normal(kb, (1, ep), dtype=jnp.float32)
        fn = jax.jit(functools.partial(
            _fused_call, patch_size=p, r_rows=r_rows,
            out_dtype=jnp.dtype(out_dtype_str), vmem_limit=vmem_limit))
        got = jax.block_until_ready(fn(x, wk, b2)).astype(jnp.float32)
        x6 = x.astype(jnp.float32).reshape(bsz, c, hp, p, wp, p)
        pat = jnp.transpose(x6, (0, 2, 4, 1, 3, 5)).reshape(bsz, hp * wp, kdim)
        ref = jnp.einsum("bnk,ke->bne",
                         pat.astype(jnp.bfloat16).astype(jnp.float32),
                         wk.astype(jnp.float32)) + b2
        return bool(jnp.allclose(got, ref.astype(jnp.float32), atol=3e-2, rtol=3e-2))
    except Exception:
        return False


# -----------------------------------------------------------------------------
# Unfused fallback path: XLA im2col glue + Pallas GEMM.
# -----------------------------------------------------------------------------
def _tile_bytes(tm, tk, te, out_itemsize, with_acc):
    b = (2 * tm * tk * 2            # patches tile, bf16, double-buffered
         + 2 * tk * te * 2          # weight tile, bf16, double-buffered
         + 2 * te * 4               # bias, f32
         + 2 * tm * te * out_itemsize)
    if with_acc:
        b += tm * te * 4            # f32 accumulator scratch
    return b


def _choose_tiles(m, k, ep, out_itemsize, budget, num_cores):
    """Pick (tm, tk, te): big M tiles; Ep(N) tiling before shrinking tm; K tiling last."""
    tm_cap = 1024
    m16 = _round_up(m, 16)                       # bf16 packs 2 rows per sublane
    if m16 <= tm_cap:
        if num_cores >= 2 and m16 >= 32:
            tm0 = _round_up(_cdiv(m16, 2), 16)   # 2 tiles -> both TensorCores busy
        else:
            tm0 = m16                            # single TC: no pointless split
    else:
        nt = _cdiv(m16, tm_cap)
        if num_cores >= 2 and nt % 2:
            nt += 1                              # even M-tile count across 2 TCs
        tm0 = _round_up(_cdiv(m16, nt), 16)

    tm_opts, t = [], tm0
    while t >= 16:
        if t not in tm_opts:
            tm_opts.append(t)
        if t == 16:
            break
        t = max(16, _round_up(t // 2, 16))

    te_opts = [d for d in range(ep, 0, -_LANE) if ep % d == 0]
    tk_opts = ([d for d in range(k, 0, -_LANE) if k % d == 0] if k % _LANE == 0 else [k])

    # Pass 1: full K (single-K-step kernel, no accumulator); shrink Ep before M.
    for tm in [t for t in tm_opts if t >= min(tm0, 256)]:
        for te in te_opts:
            if _tile_bytes(tm, k, te, out_itemsize, with_acc=False) <= budget:
                return tm, k, te
    # Pass 2: K tiling with f32 accumulator (huge-K fallback).
    for tm in tm_opts:
        for te in te_opts:
            for tk in tk_opts:
                if _tile_bytes(tm, tk, te, out_itemsize, with_acc=True) <= budget:
                    return tm, tk, te
    # Last resort: smallest tiles (always fits any sane budget).
    return tm_opts[-1], tk_opts[-1], te_opts[-1]


def _unfused_call(x, w_ke, b2d, *, patch_size, out_dtype, tile_budget, vmem_limit,
                  num_cores):
    """XLA im2col + Pallas GEMM.  Returns (B, N, Ep)."""
    bsz, c, h, w = x.shape
    p = patch_size
    hp, wp = h // p, w // p
    n = hp * wp
    m = bsz * n
    kdim = c * p * p
    ep = w_ke.shape[1]
    out_itemsize = jnp.dtype(out_dtype).itemsize

    tm, tk, te = _choose_tiles(m, kdim, ep, out_itemsize, tile_budget, num_cores)
    mp = _round_up(m, tm)

    # im2col in (c, ph, pw) order; fused by XLA with the bf16 cast and the M pad.
    patches = x.astype(jnp.bfloat16).reshape(bsz, c, hp, p, wp, p)
    patches = patches.transpose(0, 2, 4, 1, 3, 5).reshape(m, kdim)
    if mp != m:
        patches = jnp.pad(patches, ((0, mp - m), (0, 0)))

    ne, nm, nk = ep // te, mp // tm, kdim // tk
    cost = pl.CostEstimate(
        flops=2 * mp * kdim * ep,
        transcendentals=0,
        bytes_accessed=mp * kdim * 2 + kdim * ep * 2 + ep * 4 + mp * ep * out_itemsize,
    )

    if nk == 1:
        out = pl.pallas_call(
            _gemm_bias_kernel,
            out_shape=jax.ShapeDtypeStruct((mp, ep), out_dtype),
            grid_spec=pltpu.PrefetchScalarGridSpec(
                num_scalar_prefetch=0,
                grid=(ne, nm),
                in_specs=[
                    pl.BlockSpec((tm, kdim), lambda e, i: (i, 0)),
                    pl.BlockSpec((kdim, te), lambda e, i: (0, e)),
                    pl.BlockSpec((1, te), lambda e, i: (0, e)),
                ],
                out_specs=pl.BlockSpec((tm, te), lambda e, i: (i, e)),
            ),
            compiler_params=pltpu.CompilerParams(
                dimension_semantics=("parallel", "parallel"),
                vmem_limit_bytes=vmem_limit,
            ),
            cost_estimate=cost,
        )(patches, w_ke, b2d)
    else:
        out = pl.pallas_call(
            _gemm_bias_acc_kernel,
            out_shape=jax.ShapeDtypeStruct((mp, ep), out_dtype),
            grid_spec=pltpu.PrefetchScalarGridSpec(
                num_scalar_prefetch=0,
                grid=(ne, nm, nk),
                in_specs=[
                    pl.BlockSpec((tm, tk), lambda e, i, kk: (i, kk)),
                    pl.BlockSpec((tk, te), lambda e, i, kk: (kk, e)),
                    pl.BlockSpec((1, te), lambda e, i, kk: (0, e)),
                ],
                out_specs=pl.BlockSpec((tm, te), lambda e, i, kk: (i, e)),
                scratch_shapes=[pltpu.VMEM((tm, te), jnp.float32)],
            ),
            compiler_params=pltpu.CompilerParams(
                dimension_semantics=("parallel", "parallel", "arbitrary"),
                vmem_limit_bytes=vmem_limit,
            ),
            cost_estimate=cost,
        )(patches, w_ke, b2d)
    return out[:m].reshape(bsz, n, ep)


# -----------------------------------------------------------------------------
# Public forward pass.
# -----------------------------------------------------------------------------
def patch_embedding(x, w_ke, b2d, *, patch_size, embed_dim, out_dtype=None, fuse=None):
    """PatchEmbedding forward: x (B, C, H, W) -> (B, N, embed_dim).

    w_ke / b2d come from prepare_patch_embed_params.  out_dtype=None keeps x.dtype;
    pass jnp.bfloat16 to halve the output HBM write when downstream blocks run bf16.
    fuse=None auto-selects the fused (in-kernel extraction) path when it compiles and
    verifies for this shape/generation; fuse=False forces the im2col + GEMM path.
    Note: operands go through bf16 before the MXU (f32 accumulate) - a small,
    deliberate numerics deviation from PyTorch's f32 Conv2d.
    """
    bsz, c, h, w = x.shape
    p = patch_size
    assert h % p == 0 and w % p == 0, "H and W must be divisible by patch_size"
    hp, wp = h // p, w // p
    n = hp * wp
    kdim = c * p * p
    ep = w_ke.shape[1]
    assert w_ke.shape[0] == kdim, "weight / input channel-patch mismatch"
    assert embed_dim <= ep, "embed_dim larger than prepared weight"
    out_dtype = jnp.dtype(x.dtype if out_dtype is None else out_dtype)

    tile_budget, vmem_limit, _, num_cores = _budgets()

    r_rows = _fused_row_block(tuple(x.shape), jnp.dtype(x.dtype).itemsize, p, ep,
                              out_dtype.itemsize, tile_budget)
    if fuse is None:
        use_fused = (r_rows is not None and
                     _fused_probe_ok(tuple(x.shape), jnp.dtype(x.dtype).name, p, ep,
                                     r_rows, out_dtype.name, vmem_limit))
    else:
        use_fused = bool(fuse) and r_rows is not None

    if use_fused:
        out = _fused_call(x, w_ke, b2d, patch_size=p, r_rows=r_rows,
                          out_dtype=out_dtype, vmem_limit=vmem_limit)
    else:
        out = _unfused_call(x, w_ke, b2d, patch_size=p, out_dtype=out_dtype,
                            tile_budget=tile_budget, vmem_limit=vmem_limit,
                            num_cores=num_cores)
    return out[..., :embed_dim]


if __name__ == "__main__":
    B, C, H, W = 2, 4, 16, 16
    patch_size = 4
    embed_dim = 32

    key = jax.random.PRNGKey(0)
    kx, kw, kb = jax.random.split(key, 3)
    x = jax.random.normal(kx, (B, C, H, W), dtype=jnp.float32)
    weight = jax.random.normal(kw, (embed_dim, C, patch_size, patch_size),
                               dtype=jnp.float32) * 0.02
    bias = jax.random.normal(kb, (embed_dim,), dtype=jnp.float32) * 0.02

    # One-time parameter prep (outside the hot path), then the jitted forward.
    w_ke, b2d = prepare_patch_embed_params(weight, bias)
    fwd = jax.jit(functools.partial(patch_embedding,
                                    patch_size=patch_size, embed_dim=embed_dim))
    out = jax.block_until_ready(fwd(x, w_ke, b2d))

    # Reference: f32 conv (PyTorch Conv2d semantics) -> flatten(2) -> transpose(1, 2).
    ref = jax.lax.conv_general_dilated(
        x, weight, window_strides=(patch_size, patch_size), padding="VALID",
        dimension_numbers=("NCHW", "OIHW", "NCHW"))
    ref = ref + bias.reshape(1, embed_dim, 1, 1)
    ref = ref.reshape(B, embed_dim, -1).transpose(0, 2, 1)

    n_tokens = (H // patch_size) * (W // patch_size)
    assert out.shape == (B, n_tokens, embed_dim), out.shape
    # bf16 MXU operands + f32 accumulation -> relaxed tolerance vs the f32 reference.
    err = float(jnp.max(jnp.abs(out.astype(jnp.float32) - ref)))
    assert jnp.allclose(out.astype(jnp.float32), ref, atol=1e-2, rtol=1e-2), err
    print("KERNEL_OK")
</pallas_src>

<mosaic_0001>
module attributes {stable_mosaic.version = 11 : i64} {
  func.func @_fused_patch_embed_kernel(%arg0: i32, %arg1: i32, %arg2: memref<1x4x4x4x4x4xf32, #tpu.memory_space<vmem>>, %arg3: memref<64x128xbf16, #tpu.memory_space<vmem>>, %arg4: memref<1x128xf32, #tpu.memory_space<vmem>>, %arg5: memref<1x16x128xf32, #tpu.memory_space<vmem>>) attributes {dimension_semantics = [#tpu.dimension_semantics<parallel>, #tpu.dimension_semantics<parallel>], iteration_bounds = array<i64: 2, 1>, scalar_prefetch = 0 : i64, scratch_operands = 0 : i64, tpu.core_type = #tpu.core_type<tc>, window_params = [{transform_indices = @transform_0, window_bounds = array<i64: 1, 4, 4, 4, 4, 4>}, {pipeline_mode = #tpu.pipeline_mode<synchronous>, transform_indices = @transform_1, window_bounds = array<i64: 64, 128>}, {pipeline_mode = #tpu.pipeline_mode<synchronous>, transform_indices = @transform_2, window_bounds = array<i64: 1, 128>}, {transform_indices = @transform_3, window_bounds = array<i64: 1, 16, 128>}]} {
    %c0 = arith.constant 0 : index
    %c0_0 = arith.constant 0 : index
    %c0_1 = arith.constant 0 : index
    %c0_2 = arith.constant 0 : index
    %c0_3 = arith.constant 0 : index
    %c0_4 = arith.constant 0 : index
    %0 = vector.load %arg2[%c0, %c0_0, %c0_1, %c0_2, %c0_3, %c0_4] : memref<1x4x4x4x4x4xf32, #tpu.memory_space<vmem>>, vector<1x4x4x4x4x4xf32>
    %1 = vector.shape_cast %0 : vector<1x4x4x4x4x4xf32> to vector<4x4x4x4x4xf32>
    %2 = tpu.transpose %1, [1, 3, 0, 2, 4] : vector<4x4x4x4x4xf32> -> vector<4x4x4x4x4xf32>
    %3 = vector.shape_cast %2 : vector<4x4x4x4x4xf32> to vector<16x64xf32>
    %4 = arith.truncf %3 : vector<16x64xf32> to vector<16x64xbf16>
    %c0_5 = arith.constant 0 : index
    %c0_6 = arith.constant 0 : index
    %5 = vector.load %arg3[%c0_5, %c0_6] : memref<64x128xbf16, #tpu.memory_space<vmem>>, vector<64x128xbf16>
    %cst = arith.constant dense<0.000000e+00> : vector<16x128xf32>
    %6 = tpu.matmul %4, %5, %cst {dimension_numbers = #tpu.dot_dimension_numbers<[1], [0], [0], [1], [0, 0, 1, 1], [], []>} : vector<16x64xbf16>, vector<64x128xbf16>, vector<16x128xf32> -> vector<16x128xf32>
    %c0_7 = arith.constant 0 : index
    %c0_8 = arith.constant 0 : index
    %7 = vector.load %arg4[%c0_7, %c0_8] : memref<1x128xf32, #tpu.memory_space<vmem>>, vector<1x128xf32>
    %8 = vector.broadcast %7 : vector<1x128xf32> to vector<16x128xf32>
    %9 = arith.addf %6, %8 : vector<16x128xf32>
    %c0_9 = arith.constant 0 : index
    %c0_10 = arith.constant 0 : index
    %c0_11 = arith.constant 0 : index
    %10 = vector.load %arg5[%c0_9, %c0_10, %c0_11] : memref<1x16x128xf32, #tpu.memory_space<vmem>>, vector<1x16x128xf32>
    %11 = vector.shape_cast %10 : vector<1x16x128xf32> to vector<16x128xf32>
    %12 = vector.shape_cast %9 : vector<16x128xf32> to vector<1x16x128xf32>
    tpu.vector_store %arg5[%c0_9, %c0_10, %c0_11], %12 {strides = array<i32>} : memref<1x16x128xf32, #tpu.memory_space<vmem>>, vector<1x16x128xf32>,
    return
  }
  func.func @transform_0(%arg0: i32, %arg1: i32) -> (i32, i32, i32, i32, i32, i32) {
    %c0_i32 = arith.constant 0 : i32
    %c0_i32_0 = arith.constant 0 : i32
    %c0_i32_1 = arith.constant 0 : i32
    %c0_i32_2 = arith.constant 0 : i32
    %c0_i32_3 = arith.constant 0 : i32
    return %arg0, %c0_i32, %arg1, %c0_i32_0, %c0_i32_1, %c0_i32_2 : i32, i32, i32, i32, i32, i32
  }
  func.func @transform_1(%arg0: i32, %arg1: i32) -> (i32, i32) {
    %c0_i32 = arith.constant 0 : i32
    %c0_i32_0 = arith.constant 0 : i32
    %c0_i32_1 = arith.constant 0 : i32
    return %c0_i32, %c0_i32_0 : i32, i32
  }
  func.func @transform_2(%arg0: i32, %arg1: i32) -> (i32, i32) {
    %c0_i32 = arith.constant 0 : i32
    %c0_i32_0 = arith.constant 0 : i32
    %c0_i32_1 = arith.constant 0 : i32
    return %c0_i32, %c0_i32_0 : i32, i32
  }
  func.func @transform_3(%arg0: i32, %arg1: i32) -> (i32, i32, i32) {
    %c0_i32 = arith.constant 0 : i32
    %c0_i32_0 = arith.constant 0 : i32
    return %arg0, %arg1, %c0_i32 : i32, i32, i32
  }
}

module attributes {stable_mosaic.version = 11 : i64} {
  func.func @_gemm_bias_kernel(%arg0: i32, %arg1: i32, %arg2: memref<32x64xbf16, #tpu.memory_space<vmem>>, %arg3: memref<64x128xbf16, #tpu.memory_space<vmem>>, %arg4: memref<1x128xf32, #tpu.memory_space<vmem>>, %arg5: memref<32x128xf32, #tpu.memory_space<vmem>>) attributes {dimension_semantics = [#tpu.dimension_semantics<parallel>, #tpu.dimension_semantics<parallel>], iteration_bounds = array<i64: 1, 1>, scalar_prefetch = 0 : i64, scratch_operands = 0 : i64, tpu.core_type = #tpu.core_type<tc>, window_params = [{transform_indices = @transform_0, window_bounds = array<i64: 32, 64>}, {transform_indices = @transform_1, window_bounds = array<i64: 64, 128>}, {transform_indices = @transform_2, window_bounds = array<i64: 1, 128>}, {transform_indices = @transform_3, window_bounds = array<i64: 32, 128>}]} {
    %c0 = arith.constant 0 : index
    %c0_0 = arith.constant 0 : index
    %0 = vector.load %arg2[%c0, %c0_0] : memref<32x64xbf16, #tpu.memory_space<vmem>>, vector<32x64xbf16>
    %c0_1 = arith.constant 0 : index
    %c0_2 = arith.constant 0 : index
    %1 = vector.load %arg3[%c0_1, %c0_2] : memref<64x128xbf16, #tpu.memory_space<vmem>>, vector<64x128xbf16>
    %cst = arith.constant dense<0.000000e+00> : vector<32x128xf32>
    %2 = tpu.matmul %0, %1, %cst {dimension_numbers = #tpu.dot_dimension_numbers<[1], [0], [0], [1], [0, 0, 1, 1], [], []>} : vector<32x64xbf16>, vector<64x128xbf16>, vector<32x128xf32> -> vector<32x128xf32>
    %c0_3 = arith.constant 0 : index
    %c0_4 = arith.constant 0 : index
    %3 = vector.load %arg4[%c0_3, %c0_4] : memref<1x128xf32, #tpu.memory_space<vmem>>, vector<1x128xf32>
    %4 = vector.broadcast %3 : vector<1x128xf32> to vector<32x128xf32>
    %5 = arith.addf %2, %4 : vector<32x128xf32>
    %c0_5 = arith.constant 0 : index
    %c0_6 = arith.constant 0 : index
    %6 = vector.load %arg5[%c0_5, %c0_6] : memref<32x128xf32, #tpu.memory_space<vmem>>, vector<32x128xf32>
    tpu.vector_store %arg5[%c0_5, %c0_6], %5 {strides = array<i32>} : memref<32x128xf32, #tpu.memory_space<vmem>>, vector<32x128xf32>,
    return
  }
  func.func @transform_0(%arg0: i32, %arg1: i32) -> (i32, i32) {
    %c0_i32 = arith.constant 0 : i32
    %c0_i32_0 = arith.constant 0 : i32
    return %arg1, %c0_i32 : i32, i32
  }
  func.func @transform_1(%arg0: i32, %arg1: i32) -> (i32, i32) {
    %c0_i32 = arith.constant 0 : i32
    %c0_i32_0 = arith.constant 0 : i32
    return %c0_i32, %arg0 : i32, i32
  }
  func.func @transform_2(%arg0: i32, %arg1: i32) -> (i32, i32) {
    %c0_i32 = arith.constant 0 : i32
    %c0_i32_0 = arith.constant 0 : i32
    return %c0_i32, %arg0 : i32, i32
  }
  func.func @transform_3(%arg0: i32, %arg1: i32) -> (i32, i32) {
    %c0_i32 = arith.constant 0 : i32
    return %arg1, %arg0 : i32, i32
  }
}

</mosaic_0001>

<bundles_post_ra>
// kernel: patch_embedding.1
= control target key start
LH: loop header
LB: loop body
LE: loop exit
PB: predicated region body
PF: predicated region fallthrough
CT: control target
= control target key end

     0   :  { %vm69_vm0 = vcmask 523264   ;;  %s261_s0 = inlined_call_operand.vmem [shape: bf16[32,64], index: 0, kind: input, shape index: {}]   ;;  %s262_s1 = inlined_call_operand.vmem [shape: bf16[64,128], index: 1, kind: input, shape index: {}]   ;;  %s263_s2 = inlined_call_operand.vmem [shape: f32[1,128], index: 2, kind: input, shape index: {}]   ;;  %s264_s3 = inlined_call_operand.hbm [shape: f32[32,128], index: 3, kind: output, shape index: {}]  }
   0x1   :  { %v175_v0 = vld [vmem:[%s262_s1] sm:$0xff]   ;;  %v176_v1 = vld [vmem:[%s262_s1 + $0x8] sm:$0xff]   ;;  %v177_v2 = vld [vmem:[%s262_s1 + $0x10] sm:$0xff]  }
   0x2   :  { %160 = vmatprep.subr.bf16.mxu0 %v175_v0  ;;  %v179_v3 = vld [vmem:[%s261_s0] sm:$0xff]  }
   0x3   :  { %161 = vmatpush3.bf16.msra.mxu0 %v175_v0  ;;  %168 = vmatprep.mubr.msk.bf16.mxu0 %vm69_vm0, %v179_v3 }
   0x4   :  { %162 = vmatprep.subr.bf16.mxu0 %v176_v1 }
   0x5   :  { %8 = vsyncpa [#allocation3], 0  ;;  %v178_v4 = vld [vmem:[%s262_s1 + $0x18] sm:$0xff]   ;;  %v180_v5 = vld [vmem:[%s261_s0 + $0x8] sm:$0xff]   ;;  %s205_s26 = smov [#allocation2]  }
   0x6   :  { %v145_v6 = vld [vmem:[%s263_s2] ss:$0 sm:$0xff]  ;;  %s134_s27 = sshll.u32 %s205_s26, 4  ;;  %s135_s27 = int_to_ptr.vmem [resolvable:$true] %s134_s27 }
   0x7   :  { %163 = vmatpush3.bf16.msra.mxu0 %v176_v1  ;;  %s181_s0 = scalar_lea.vmem %s135_s27, 512  ;;  %p186_p1 = scmp.lt.s32.totalorder %s135_s27, %s135_s27 }
   0x8   :  { %164 = vmatprep.subr.bf16.mxu0 %v177_v2  ;;  %p182_p0 = scmp.ne.s32.totalorder %s135_s27, %s181_s0  ;;  %p187_p2 = scmp.lt.s32.totalorder %s181_s0, %s181_s0 }
   0xa   :  { %p188_p3 = por %p187_p2, %p186_p1 }
   0xb   :  { %165 = vmatpush3.bf16.msra.mxu0 %v177_v2 }
   0xc   :  { %166 = vmatprep.subr.bf16.mxu0 %v178_v4  ;;  %p189_p4 = pnand %p188_p3, %p182_p0 }
   0xf   :  { %167 = vmatpush3.bf16.msra.mxu0 %v178_v4 }
  0x12   :  { %169 = vmatmul.mubr.msk.bf16.vlgmr.msra.gmra.mrb[0].mxu0 %vm69_vm0, %v180_v5 }
  0xe5   :  { %v170_v7 = vpop.f32.mrb[0].mxu0 }
  0xe6   :  { %v119_v8 = vadd.f32 %v170_v7, %v145_v6  ;;  %v110_v9 = vpop.f32.mrb[1].mxu0 }
  0xe7   :  { %v111_v10 = vadd.f32 %v145_v6, %v110_v9  ;;  %v171_v11 = vpop.f32.mrb[2].mxu0 }
  0xe8   :  { %127 = vst [vmem:[#allocation2 + $0x10] sm:$0xff] %v119_v8  ;;  %v122_v12 = vadd.f32 %v171_v11, %v145_v6  ;;  %v113_v13 = vpop.f32.mrb[3].mxu0 }
  0xe9   :  { %125 = vst [vmem:[#allocation2] sm:$0xff] %v111_v10  ;;  %v114_v14 = vadd.f32 %v145_v6, %v113_v13 }
  0xea   :  { %128 = vst [vmem:[#allocation2 + $0x18] sm:$0xff] %v122_v12 }
  0xeb   :  { %126 = vst [vmem:[#allocation2 + $0x8] sm:$0xff] %v114_v14 }
  0xec   :  { %192 = shalt.err (!%p189_p4)
}
  0xed   :  { %s193_s28 = scalar_lea.hbm %s264_s3, 512 }
  0xee   :  { %p194_p5 = scmp.ne.s32.totalorder %s264_s3, %s193_s28  ;;  %p197_p6 = scmp.lt.u32.totalorder %s193_s28, %s264_s3 }
  0xf0   :  { %p199_p7 = pnand %p197_p6, %p194_p5 }
  0xf2   :  { %202 = shalt.err (!%p199_p7)
}
  0xf3   :  { %s206_s6 = smov 128   ;;  %s207_s7 = smov 8  }
  0xf4   :  { %140 = dma.vmem_to_hbm [thread:$0]  %s135_s27, 512, %s264_s3, [#allocation3], %s206_s6, %s206_s6, %s207_s7  }
  0xf5   :  { %203 = dma.done.wait [#allocation3], 512  }
  0xf6   :  { %204 = vsyncadd [#allocation3], 4294966784 }
  0xf7   :  { %144 = vsyncpa [#allocation3], 1 }

</bundles_post_ra>
